<compile_context>
chip_gen: v7x
topology: tpu7x:2x2x1
jax: 0.10.0
libtpu: 0.0.40
codegen_flags: <defaults>
</compile_context>

<pallas_src>
import functools

import jax
import jax.numpy as jnp
from jax import lax
from jax.experimental import pallas as pl
from jax.experimental.pallas import tpu as pltpu


def _round_up(x, m):
    return ((x + m - 1) // m) * m


def _gram_kernel(fi_ref, fj_ref, o_ref, acc_ref, *, scale, n_k):
    i = pl.program_id(0)
    j = pl.program_id(1)
    k = pl.program_id(2)

    @pl.when(k == 0)
    def _():
        acc_ref[...] = jnp.zeros_like(acc_ref)

    # Gram is symmetric: only accumulate for block-upper-triangle tiles.
    # Strictly-lower tiles keep a zero accumulator and are reconstructed
    # from the upper triangle in the wrapper.
    @pl.when(j >= i)
    def _():
        acc_ref[...] += lax.dot_general(
            fi_ref[...], fj_ref[...],
            dimension_numbers=(((1,), (1,)), ((), ())),  # contract K on both
            preferred_element_type=jnp.float32,
        )

    @pl.when(k == n_k - 1)
    def _():
        o_ref[...] = (acc_ref[...] * scale).astype(o_ref.dtype)


def gram(x, *, tm=128, tn=128, tk=512):
    """x: (a, b, c, d) NCHW array. Returns (a*b, a*b) gram matrix (float32)."""
    a, b, c, d = x.shape
    M = a * b
    K = c * d
    scale = 1.0 / float(a * b * c * d)

    feature = x.reshape(M, K).astype(jnp.float32)  # glue reshape in plain JAX

    # Lane-dense / MXU-friendly padding. Zero padding is exact: padded columns
    # contribute 0 to the products, padded rows are sliced off below.
    tk = min(tk, _round_up(K, 128))
    M_pad = _round_up(M, max(tm, tn))
    K_pad = _round_up(K, tk)
    if (M_pad, K_pad) != (M, K):
        feature = jnp.pad(feature, ((0, M_pad - M), (0, K_pad - K)))

    n_i = M_pad // tm
    n_j = M_pad // tn
    n_k = K_pad // tk

    kernel = functools.partial(_gram_kernel, scale=scale, n_k=n_k)

    out = pl.pallas_call(
        kernel,
        out_shape=jax.ShapeDtypeStruct((M_pad, M_pad), jnp.float32),
        grid_spec=pltpu.PrefetchScalarGridSpec(
            num_scalar_prefetch=0,
            grid=(n_i, n_j, n_k),
            in_specs=[
                pl.BlockSpec((tm, tk), lambda i, j, k: (i, k)),  # row tile
                pl.BlockSpec((tn, tk), lambda i, j, k: (j, k)),  # col tile
            ],
            out_specs=pl.BlockSpec((tm, tn), lambda i, j, k: (i, j)),
            scratch_shapes=[pltpu.VMEM((tm, tn), jnp.float32)],
        ),
        compiler_params=pltpu.CompilerParams(
            dimension_semantics=("parallel", "parallel", "arbitrary"),
        ),
        cost_estimate=pl.CostEstimate(
            flops=2 * M_pad * M_pad * K_pad,
            transcendentals=0,
            bytes_accessed=(M_pad * K_pad + M_pad * M_pad) * 4,
        ),
    )(feature, feature)

    out = out[:M, :M]
    # Mirror the computed upper triangle into the skipped lower triangle.
    out = jnp.triu(out) + jnp.triu(out, 1).T
    return out


if __name__ == "__main__":
    key = jax.random.PRNGKey(0)
    # Small NCHW input consistent with the module's forward: (a, b, c, d)
    x = jax.random.normal(key, (2, 4, 16, 16), dtype=jnp.float32)

    out = gram(x)
    out = jax.block_until_ready(out)

    # Reference check (plain JAX) to make sure semantics match torch.mm path.
    a, b, c, d = x.shape
    feat = x.reshape(a * b, c * d)
    ref = (feat @ feat.T) / (a * b * c * d)
    assert out.shape == (a * b, a * b)
    assert jnp.allclose(out, ref, atol=1e-5, rtol=1e-5)

    print("KERNEL_OK")
</pallas_src>

<mosaic_0001>
module attributes {stable_mosaic.version = 11 : i64} {
  func.func @_gram_kernel(%arg0: i32, %arg1: i32, %arg2: i32, %arg3: memref<128x256xf32, #tpu.memory_space<vmem>>, %arg4: memref<128x256xf32, #tpu.memory_space<vmem>>, %arg5: memref<128x128xf32, #tpu.memory_space<vmem>>, %arg6: memref<128x128xf32, #tpu.memory_space<vmem>>) attributes {dimension_semantics = [#tpu.dimension_semantics<parallel>, #tpu.dimension_semantics<parallel>, #tpu.dimension_semantics<arbitrary>], iteration_bounds = array<i64: 1, 1, 1>, scalar_prefetch = 0 : i64, scratch_operands = 1 : i64, tpu.core_type = #tpu.core_type<tc>, window_params = [{transform_indices = @transform_0, window_bounds = array<i64: 128, 256>}, {transform_indices = @transform_1, window_bounds = array<i64: 128, 256>}, {transform_indices = @transform_2, window_bounds = array<i64: 128, 128>}]} {
    %c0_i32 = arith.constant 0 : i32
    %0 = arith.cmpi eq, %arg2, %c0_i32 : i32
    %1 = arith.extui %0 : i1 to i32
    %c0_i32_0 = arith.constant 0 : i32
    %2 = arith.cmpi ne, %1, %c0_i32_0 : i32
    scf.if %2 {
      %cst = arith.constant 0.000000e+00 : f32
      %9 = vector.broadcast %cst : f32 to vector<128x128xf32>
      %c0 = arith.constant 0 : index
      %c0_4 = arith.constant 0 : index
      %10 = vector.load %arg6[%c0, %c0_4] : memref<128x128xf32, #tpu.memory_space<vmem>>, vector<128x128xf32>
      tpu.vector_store %arg6[%c0, %c0_4], %9 {strides = array<i32>} : memref<128x128xf32, #tpu.memory_space<vmem>>, vector<128x128xf32>,
    } else {
    }
    %3 = arith.cmpi sge, %arg1, %arg0 : i32
    %4 = arith.extui %3 : i1 to i32
    %c0_i32_1 = arith.constant 0 : i32
    %5 = arith.cmpi ne, %4, %c0_i32_1 : i32
    scf.if %5 {
      %c0 = arith.constant 0 : index
      %c0_4 = arith.constant 0 : index
      %9 = vector.load %arg6[%c0, %c0_4] : memref<128x128xf32, #tpu.memory_space<vmem>>, vector<128x128xf32>
      %c0_5 = arith.constant 0 : index
      %c0_6 = arith.constant 0 : index
      %10 = vector.load %arg3[%c0_5, %c0_6] : memref<128x256xf32, #tpu.memory_space<vmem>>, vector<128x256xf32>
      %c0_7 = arith.constant 0 : index
      %c0_8 = arith.constant 0 : index
      %11 = vector.load %arg4[%c0_7, %c0_8] : memref<128x256xf32, #tpu.memory_space<vmem>>, vector<128x256xf32>
      %cst = arith.constant dense<0.000000e+00> : vector<128x128xf32>
      %12 = tpu.matmul %10, %11, %cst {dimension_numbers = #tpu.dot_dimension_numbers<[1], [1], [0], [0], [0, 0, 1, 0], [], []>} : vector<128x256xf32>, vector<128x256xf32>, vector<128x128xf32> -> vector<128x128xf32>
      %13 = arith.addf %9, %12 : vector<128x128xf32>
      %c0_9 = arith.constant 0 : index
      %c0_10 = arith.constant 0 : index
      %14 = vector.load %arg6[%c0_9, %c0_10] : memref<128x128xf32, #tpu.memory_space<vmem>>, vector<128x128xf32>
      tpu.vector_store %arg6[%c0_9, %c0_10], %13 {strides = array<i32>} : memref<128x128xf32, #tpu.memory_space<vmem>>, vector<128x128xf32>,
    } else {
    }
    %c0_i32_2 = arith.constant 0 : i32
    %6 = arith.cmpi eq, %arg2, %c0_i32_2 : i32
    %7 = arith.extui %6 : i1 to i32
    %c0_i32_3 = arith.constant 0 : i32
    %8 = arith.cmpi ne, %7, %c0_i32_3 : i32
    scf.if %8 {
      %c0 = arith.constant 0 : index
      %c0_4 = arith.constant 0 : index
      %9 = vector.load %arg6[%c0, %c0_4] : memref<128x128xf32, #tpu.memory_space<vmem>>, vector<128x128xf32>
      %cst = arith.constant 4.8828125E-4 : f32
      %10 = vector.broadcast %cst : f32 to vector<128x128xf32>
      %11 = arith.mulf %9, %10 : vector<128x128xf32>
      %c0_5 = arith.constant 0 : index
      %c0_6 = arith.constant 0 : index
      %12 = vector.load %arg5[%c0_5, %c0_6] : memref<128x128xf32, #tpu.memory_space<vmem>>, vector<128x128xf32>
      tpu.vector_store %arg5[%c0_5, %c0_6], %11 {strides = array<i32>} : memref<128x128xf32, #tpu.memory_space<vmem>>, vector<128x128xf32>,
    } else {
    }
    return
  }
  func.func @transform_0(%arg0: i32, %arg1: i32, %arg2: i32) -> (i32, i32) {
    %c0_i32 = arith.constant 0 : i32
    return %arg0, %arg2 : i32, i32
  }
  func.func @transform_1(%arg0: i32, %arg1: i32, %arg2: i32) -> (i32, i32) {
    %c0_i32 = arith.constant 0 : i32
    return %arg1, %arg2 : i32, i32
  }
  func.func @transform_2(%arg0: i32, %arg1: i32, %arg2: i32) -> (i32, i32) {
    %c0_i32 = arith.constant 0 : i32
    return %arg0, %arg1 : i32, i32
  }
}

</mosaic_0001>

<bundles_post_ra>
// kernel: tpu_custom_call.1
= control target key start
LH: loop header
LB: loop body
LE: loop exit
PB: predicated region body
PF: predicated region fallthrough
CT: control target
= control target key end

     0   :  { %7 = vsyncpa [#allocation4], 0  ;;  %s575_s0 = inlined_call_operand.hbm [shape: f32[128,256], index: 0, kind: input, shape index: {}]   ;;  %s576_s1 = inlined_call_operand.hbm [shape: f32[128,256], index: 1, kind: input, shape index: {}]   ;;  %s577_s2 = inlined_call_operand.hbm [shape: f32[128,128], index: 2, kind: output, shape index: {}]  }
   0x1   :  { %8 = vsyncpa [#allocation7], 0 }
   0x2   :  { %9 = vsyncpa [#allocation5], 0  ;;  %s517_s9 = smov [#allocation3]   ;;  %s445_s13 = scalar_lea.hbm %s575_s0, 4096 }
   0x3   :  { %s15_s10 = sshll.u32 %s517_s9, 4  ;;  %p446_p0 = scmp.ne.s32.totalorder %s575_s0, %s445_s13  ;;  %s16_s10 = int_to_ptr.vmem [resolvable:$true] %s15_s10 }
   0x4   :  { %p449_p1 = scmp.lt.u32.totalorder %s445_s13, %s575_s0 }
   0x6   :  { %p451_p2 = pnand %p449_p1, %p446_p0 }
   0x8   :  { %454 = shalt.err (!%p451_p2)
}
   0x9   :  { %s455_s18 = scalar_lea.vmem %s16_s10, 4096  ;;  %p460_p4 = scmp.lt.s32.totalorder %s16_s10, %s16_s10 }
   0xa   :  { %p456_p3 = scmp.ne.s32.totalorder %s16_s10, %s455_s18  ;;  %p461_p5 = scmp.lt.s32.totalorder %s455_s18, %s455_s18 }
   0xc   :  { %p462_p6 = por %p461_p5, %p460_p4 }
   0xe   :  { %p463_p7 = pnand %p462_p6, %p456_p3 }
  0x10   :  { %466 = shalt.err (!%p463_p7)
}
  0x11   :  { %s518_s19 = smov 256   ;;  %s519_s20 = smov 16  }
  0x12   :  { %21 = dma.hbm_to_vmem [thread:$0]  %s575_s0, 4096, %s16_s10, [#allocation4], %s518_s19, %s518_s19, %s519_s20  }
  0x13   :  { %s520_s23 = smov [#allocation6]   ;;  %s467_s27 = scalar_lea.hbm %s576_s1, 4096 }
  0x14   :  { %s27_s24 = sshll.u32 %s520_s23, 4  ;;  %p468_p8 = scmp.ne.s32.totalorder %s576_s1, %s467_s27  ;;  %s28_s24 = int_to_ptr.vmem [resolvable:$true] %s27_s24 }
  0x15   :  { %p471_p9 = scmp.lt.u32.totalorder %s467_s27, %s576_s1 }
  0x17   :  { %p473_p10 = pnand %p471_p9, %p468_p8 }
  0x19   :  { %476 = shalt.err (!%p473_p10)
}
  0x1a   :  { %s477_s4 = scalar_lea.vmem %s28_s24, 4096  ;;  %p482_p12 = scmp.lt.s32.totalorder %s28_s24, %s28_s24 }
  0x1b   :  { %p478_p11 = scmp.ne.s32.totalorder %s28_s24, %s477_s4  ;;  %p483_p13 = scmp.lt.s32.totalorder %s477_s4, %s477_s4 }
  0x1d   :  { %p484_p0 = por %p483_p13, %p482_p12 }
  0x1f   :  { %p485_p1 = pnand %p484_p0, %p478_p11 }
  0x21   :  { %488 = shalt.err (!%p485_p1)
}
  0x22   :  { %33 = dma.hbm_to_vmem [thread:$0]  %s576_s1, 4096, %s28_s24, [#allocation7], %s518_s19, %s518_s19, %s519_s20  }
  0x23   :  { %511 = dma.done.wait [#allocation4], 4096  }
  0x24   :  { %512 = vsyncadd [#allocation4], 4294963200 }
  0x25   :  { %513 = dma.done.wait [#allocation7], 4096  }
  0x26   :  { %514 = vsyncadd [#allocation7], 4294963200  ;;  %v113_v0 = vld [vmem:[#allocation6 + $0x8] sm:$0xff]  ;;  %v115_v1 = vld [vmem:[#allocation6 + $0x18] sm:$0xff]  ;;  %s521_s1 = smov [#allocation8]  }
  0x27   :  { %v112_v2 = vld [vmem:[#allocation6] sm:$0xff]  ;;  %v390_v3 = vpack.c.bf16 %v115_v1, %v113_v0  ;;  %v114_v4 = vld [vmem:[#allocation6 + $0x10] sm:$0xff]  ;;  %v117_v5 = vld [vmem:[#allocation6 + $0x28] sm:$0xff]  ;;  %s377_s6 = sshll.u32 %s521_s1, 4  ;;  %s378_s6 = int_to_ptr.vmem [resolvable:$true] %s377_s6 }
  0x28   :  { %v119_v6 = vld [vmem:[#allocation6 + $0x38] sm:$0xff]  ;;  %v392_v7 = vpack.c.bf16 %v114_v4, %v112_v2  ;;  %v116_v9 = vld [vmem:[#allocation6 + $0x20] sm:$0xff]  ;;  %v118_v10 = vld [vmem:[#allocation6 + $0x30] sm:$0xff]  ;;  %s489_s7 = scalar_lea.vmem %s378_s6, 2048  ;;  %p494_p3 = scmp.lt.s32.totalorder %s378_s6, %s378_s6 }
  0x29   :  { %v394_v8 = vpack.c.bf16 %v119_v6, %v117_v5  ;;  %391 = vmatprep.subr.bf16.mxu0 %v390_v3  ;;  %422 = vmatprep.subr.bf16.mxu1 %v390_v3  ;;  %v121_v11 = vld [vmem:[#allocation6 + $0x48] sm:$0xff]  ;;  %v123_v12 = vld [vmem:[#allocation6 + $0x58] sm:$0xff]  ;;  %v396_v13 = vpack.c.bf16 %v118_v10, %v116_v9  ;;  %v120_v17 = vld [vmem:[#allocation6 + $0x40] sm:$0xff]  ;;  %p490_p2 = scmp.ne.s32.totalorder %s378_s6, %s489_s7  ;;  %p495_p4 = scmp.lt.s32.totalorder %s489_s7, %s489_s7 }
  0x2a   :  { %393 = vmatpush1.bf16.xpose.msra.mxu0 %v392_v7  ;;  %430 = vmatpush1.bf16.xpose.msra.mxu1 %v392_v7  ;;  %v398_v14 = vpack.c.bf16 %v123_v12, %v121_v11  ;;  %v81_v15 = vld [vmem:[#allocation3 + $0x8] sm:$0xff]  ;;  %v122_v18 = vld [vmem:[#allocation6 + $0x50] sm:$0xff]  ;;  %v127_v20 = vld [vmem:[#allocation6 + $0x78] sm:$0xff] }
  0x2b   :  { %395 = vmatprep.subr.bf16.mxu0 %v394_v8  ;;  %423 = vmatprep.subr.bf16.mxu1 %v394_v8  ;;  %v97_v16 = vld [vmem:[#allocation3 + $0x88] sm:$0xff]  ;;  %v400_v21 = vpack.c.bf16 %v122_v18, %v120_v17  ;;  %v124_v23 = vld [vmem:[#allocation6 + $0x60] sm:$0xff]  ;;  %v126_v24 = vld [vmem:[#allocation6 + $0x70] sm:$0xff]  ;;  %p496_p5 = por %p495_p4, %p494_p3 }
  0x2c   :  { %208 = vmatprep.mubr.f32.mxu0 %v81_v15  ;;  %v125_v19 = vld [vmem:[#allocation6 + $0x68] sm:$0xff]  ;;  %248 = vmatprep.mubr.f32.mxu1 %v97_v16  ;;  %v131_v26 = vld [vmem:[#allocation6 + $0x98] sm:$0xff]  ;;  %v404_v27 = vpack.c.bf16 %v126_v24, %v124_v23  ;;  %v128_v29 = vld [vmem:[#allocation6 + $0x80] sm:$0xff] }
  0x2d   :  { %v402_v22 = vpack.c.bf16 %v127_v20, %v125_v19  ;;  %v129_v25 = vld [vmem:[#allocation6 + $0x88] sm:$0xff]  ;;  %v130_v30 = vld [vmem:[#allocation6 + $0x90] sm:$0xff]  ;;  %v135_v32 = vld [vmem:[#allocation6 + $0xb8] sm:$0xff]  ;;  %p497_p6 = pnand %p496_p5, %p490_p2 }
  0x2e   :  { %v406_v28 = vpack.c.bf16 %v131_v26, %v129_v25  ;;  %v133_v31 = vld [vmem:[#allocation6 + $0xa8] sm:$0xff]  ;;  %v408_v33 = vpack.c.bf16 %v130_v30, %v128_v29  ;;  %v132_v35 = vld [vmem:[#allocation6 + $0xa0] sm:$0xff]  ;;  %v134_v36 = vld [vmem:[#allocation6 + $0xb0] sm:$0xff] }
  0x2f   :  { %v410_v34 = vpack.c.bf16 %v135_v32, %v133_v31  ;;  %v137_v37 = vld [vmem:[#allocation6 + $0xc8] sm:$0xff]  ;;  %v139_v38 = vld [vmem:[#allocation6 + $0xd8] sm:$0xff]  ;;  %v412_v39 = vpack.c.bf16 %v134_v36, %v132_v35  ;;  %v136_v41 = vld [vmem:[#allocation6 + $0xc0] sm:$0xff] }
  0x30   :  { %v414_v40 = vpack.c.bf16 %v139_v38, %v137_v37  ;;  %v138_v42 = vld [vmem:[#allocation6 + $0xd0] sm:$0xff]  ;;  %v141_v43 = vld [vmem:[#allocation6 + $0xe8] sm:$0xff]  ;;  %v143_v44 = vld [vmem:[#allocation6 + $0xf8] sm:$0xff] }
  0x31   :  { %v416_v45 = vpack.c.bf16 %v138_v42, %v136_v41  ;;  %v418_v46 = vpack.c.bf16 %v143_v44, %v141_v43  ;;  %v140_v47 = vld [vmem:[#allocation6 + $0xe0] sm:$0xff]  ;;  %v142_v48 = vld [vmem:[#allocation6 + $0xf0] sm:$0xff]  ;;  %v83_v52 = vld [vmem:[#allocation3 + $0x18] sm:$0xff] }
  0x32   :  { %397 = vmatpush1.bf16.xpose.msra.mxu0 %v396_v13  ;;  %431 = vmatpush1.bf16.xpose.msra.mxu1 %v396_v13  ;;  %v420_v49 = vpack.c.bf16 %v142_v48, %v140_v47  ;;  %v80_v50 = vld [vmem:[#allocation3] sm:$0xff]  ;;  %v99_v53 = vld [vmem:[#allocation3 + $0x98] sm:$0xff]  ;;  %v82_v54 = vld [vmem:[#allocation3 + $0x10] sm:$0xff] }
  0x33   :  { %399 = vmatprep.subr.bf16.mxu0 %v398_v14  ;;  %424 = vmatprep.subr.bf16.mxu1 %v398_v14  ;;  %v96_v51 = vld [vmem:[#allocation3 + $0x80] sm:$0xff]  ;;  %v98_v55 = vld [vmem:[#allocation3 + $0x90] sm:$0xff]  ;;  %v85_v56 = vld [vmem:[#allocation3 + $0x28] sm:$0xff] }
  0x34   :  { %v101_v57 = vld [vmem:[#allocation3 + $0xa8] sm:$0xff]  ;;  %v84_v58 = vld [vmem:[#allocation3 + $0x20] sm:$0xff]  ;;  %v87_v60 = vld [vmem:[#allocation3 + $0x38] sm:$0xff] }
  0x35   :  { %v100_v59 = vld [vmem:[#allocation3 + $0xa0] sm:$0xff]  ;;  %v103_v61 = vld [vmem:[#allocation3 + $0xb8] sm:$0xff]  ;;  %v86_v62 = vld [vmem:[#allocation3 + $0x30] sm:$0xff] }
  0x36   :  { %v102_v63 = vld [vmem:[#allocation3 + $0xb0] sm:$0xff]  ;;  %v89_v0 = vld [vmem:[#allocation3 + $0x48] sm:$0xff]  ;;  %v88_v2 = vld [vmem:[#allocation3 + $0x40] sm:$0xff] }
  0x37   :  { %v105_v1 = vld [vmem:[#allocation3 + $0xc8] sm:$0xff]  ;;  %v104_v3 = vld [vmem:[#allocation3 + $0xc0] sm:$0xff]  ;;  %v91_v4 = vld [vmem:[#allocation3 + $0x58] sm:$0xff] }
  0x38   :  { %v107_v5 = vld [vmem:[#allocation3 + $0xd8] sm:$0xff]  ;;  %v90_v6 = vld [vmem:[#allocation3 + $0x50] sm:$0xff]  ;;  %v93_v8 = vld [vmem:[#allocation3 + $0x68] sm:$0xff] }
  0x39   :  { %v106_v7 = vld [vmem:[#allocation3 + $0xd0] sm:$0xff]  ;;  %v109_v9 = vld [vmem:[#allocation3 + $0xe8] sm:$0xff]  ;;  %v92_v10 = vld [vmem:[#allocation3 + $0x60] sm:$0xff] }
  0x3a   :  { %401 = vmatpush1.bf16.xpose.msra.mxu0 %v400_v21  ;;  %432 = vmatpush1.bf16.xpose.msra.mxu1 %v400_v21  ;;  %v108_v11 = vld [vmem:[#allocation3 + $0xe0] sm:$0xff]  ;;  %v95_v12 = vld [vmem:[#allocation3 + $0x78] sm:$0xff]  ;;  %v94_v14 = vld [vmem:[#allocation3 + $0x70] sm:$0xff] }
  0x3b   :  { %403 = vmatprep.subr.bf16.mxu0 %v402_v22  ;;  %425 = vmatprep.subr.bf16.mxu1 %v402_v22  ;;  %v111_v13 = vld [vmem:[#allocation3 + $0xf8] sm:$0xff]  ;;  %v110_v15 = vld [vmem:[#allocation3 + $0xf0] sm:$0xff] }
  0x42   :  { %405 = vmatpush1.bf16.xpose.msra.mxu0 %v404_v27  ;;  %433 = vmatpush1.bf16.xpose.msra.mxu1 %v404_v27 }
  0x43   :  { %407 = vmatprep.subr.bf16.mxu0 %v406_v28  ;;  %426 = vmatprep.subr.bf16.mxu1 %v406_v28 }
  0x4a   :  { %409 = vmatpush1.bf16.xpose.msra.mxu0 %v408_v33  ;;  %434 = vmatpush1.bf16.xpose.msra.mxu1 %v408_v33 }
  0x4b   :  { %411 = vmatprep.subr.bf16.mxu0 %v410_v34  ;;  %427 = vmatprep.subr.bf16.mxu1 %v410_v34 }
  0x52   :  { %413 = vmatpush1.bf16.xpose.msra.mxu0 %v412_v39  ;;  %435 = vmatpush1.bf16.xpose.msra.mxu1 %v412_v39 }
  0x53   :  { %415 = vmatprep.subr.bf16.mxu0 %v414_v40  ;;  %428 = vmatprep.subr.bf16.mxu1 %v414_v40 }
  0x5a   :  { %417 = vmatpush1.bf16.xpose.msra.mxu0 %v416_v45  ;;  %436 = vmatpush1.bf16.xpose.msra.mxu1 %v416_v45 }
  0x5b   :  { %419 = vmatprep.subr.bf16.mxu0 %v418_v46  ;;  %429 = vmatprep.subr.bf16.mxu1 %v418_v46 }
  0x62   :  { %421 = vmatpush1.bf16.xpose.msra.mxu0 %v420_v49  ;;  %437 = vmatpush1.bf16.xpose.msra.mxu1 %v420_v49 }
  0x69   :  { %209 = vmatmul.mubr.f32.vlgmr.msra.gmra.mrb[0].mxu0 %v80_v50  ;;  %249 = vmatmul.mubr.f32.vlgmr.msra.gmra.mrb[0].mxu1 %v96_v51 }
  0x6a   :  { %213 = vmatprep.mubr.f32.mxu0 %v83_v52  ;;  %253 = vmatprep.mubr.f32.mxu1 %v99_v53 }
  0x6d   :  { %214 = vmatmul.mubr.f32.gmra.mrb[2].mxu0 %v82_v54  ;;  %254 = vmatmul.mubr.f32.gmra.mrb[2].mxu1 %v98_v55 }
  0x6e   :  { %218 = vmatprep.mubr.f32.mxu0 %v85_v56  ;;  %258 = vmatprep.mubr.f32.mxu1 %v101_v57 }
  0x71   :  { %219 = vmatmul.mubr.f32.gmra.mrb[4].mxu0 %v84_v58  ;;  %259 = vmatmul.mubr.f32.gmra.mrb[4].mxu1 %v100_v59 }
  0x72   :  { %223 = vmatprep.mubr.f32.mxu0 %v87_v60  ;;  %263 = vmatprep.mubr.f32.mxu1 %v103_v61 }
  0x75   :  { %224 = vmatmul.mubr.f32.gmra.mrb[6].mxu0 %v86_v62  ;;  %264 = vmatmul.mubr.f32.gmra.mrb[6].mxu1 %v102_v63 }
  0x76   :  { %228 = vmatprep.mubr.f32.mxu0 %v89_v0  ;;  %268 = vmatprep.mubr.f32.mxu1 %v105_v1 }
  0x79   :  { %229 = vmatmul.mubr.f32.gmra.mrb[8].mxu0 %v88_v2  ;;  %269 = vmatmul.mubr.f32.gmra.mrb[8].mxu1 %v104_v3 }
  0x7a   :  { %233 = vmatprep.mubr.f32.mxu0 %v91_v4  ;;  %273 = vmatprep.mubr.f32.mxu1 %v107_v5 }
  0x7d   :  { %234 = vmatmul.mubr.f32.gmra.mrb[10].mxu0 %v90_v6  ;;  %274 = vmatmul.mubr.f32.gmra.mrb[10].mxu1 %v106_v7 }
  0x7e   :  { %238 = vmatprep.mubr.f32.mxu0 %v93_v8  ;;  %278 = vmatprep.mubr.f32.mxu1 %v109_v9 }
  0x81   :  { %239 = vmatmul.mubr.f32.gmra.mrb[12].mxu0 %v92_v10  ;;  %279 = vmatmul.mubr.f32.gmra.mrb[12].mxu1 %v108_v11 }
  0x82   :  { %243 = vmatprep.mubr.f32.mxu0 %v95_v12  ;;  %283 = vmatprep.mubr.f32.mxu1 %v111_v13 }
  0x85   :  { %244 = vmatmul.mubr.f32.gmra.mrb[14].mxu0 %v94_v14  ;;  %284 = vmatmul.mubr.f32.gmra.mrb[14].mxu1 %v110_v15 }
 0x13c   :  { %v210_v16 = vpop.f32.mrb[0].mxu0  ;;  %v250_v17 = vpop.f32.mrb[0].mxu1 }
 0x13d   :  { %v340_v18 = vmul.f32 0.00048828125, %v210_v16  ;;  %v348_v19 = vmul.f32 0.00048828125, %v250_v17  ;;  %v212_v20 = vpop.f32.mrb[1].mxu0  ;;  %v252_v21 = vpop.f32.mrb[1].mxu1 }
 0x13f   :  { %356 = vst [vmem:[#allocation8] sm:$0xff] %v340_v18  ;;  %364 = vst [vmem:[#allocation8 + $0x40] sm:$0xff] %v348_v19 }
 0x140   :  { %v215_v22 = vpop.f32.mrb[2].mxu0  ;;  %v255_v23 = vpop.f32.mrb[2].mxu1 }
 0x141   :  { %v341_v24 = vmul.f32 0.00048828125, %v215_v22  ;;  %v349_v25 = vmul.f32 0.00048828125, %v255_v23  ;;  %v217_v26 = vpop.f32.mrb[3].mxu0  ;;  %v257_v27 = vpop.f32.mrb[3].mxu1 }
 0x143   :  { %357 = vst [vmem:[#allocation8 + $0x8] sm:$0xff] %v341_v24  ;;  %365 = vst [vmem:[#allocation8 + $0x48] sm:$0xff] %v349_v25 }
 0x144   :  { %v220_v28 = vpop.f32.mrb[4].mxu0  ;;  %v260_v29 = vpop.f32.mrb[4].mxu1 }
 0x145   :  { %v342_v30 = vmul.f32 0.00048828125, %v220_v28  ;;  %v350_v31 = vmul.f32 0.00048828125, %v260_v29  ;;  %v222_v32 = vpop.f32.mrb[5].mxu0  ;;  %v262_v33 = vpop.f32.mrb[5].mxu1 }
 0x147   :  { %358 = vst [vmem:[#allocation8 + $0x10] sm:$0xff] %v342_v30  ;;  %366 = vst [vmem:[#allocation8 + $0x50] sm:$0xff] %v350_v31 }
 0x148   :  { %v225_v34 = vpop.f32.mrb[6].mxu0  ;;  %v265_v35 = vpop.f32.mrb[6].mxu1 }
 0x149   :  { %v343_v36 = vmul.f32 0.00048828125, %v225_v34  ;;  %v351_v37 = vmul.f32 0.00048828125, %v265_v35  ;;  %v227_v38 = vpop.f32.mrb[7].mxu0  ;;  %v267_v39 = vpop.f32.mrb[7].mxu1 }
 0x14b   :  { %359 = vst [vmem:[#allocation8 + $0x18] sm:$0xff] %v343_v36  ;;  %367 = vst [vmem:[#allocation8 + $0x58] sm:$0xff] %v351_v37 }
 0x14c   :  { %v230_v40 = vpop.f32.mrb[8].mxu0  ;;  %v270_v41 = vpop.f32.mrb[8].mxu1 }
 0x14d   :  { %v344_v42 = vmul.f32 0.00048828125, %v230_v40  ;;  %v352_v43 = vmul.f32 0.00048828125, %v270_v41  ;;  %v232_v44 = vpop.f32.mrb[9].mxu0  ;;  %v272_v45 = vpop.f32.mrb[9].mxu1 }
 0x14f   :  { %360 = vst [vmem:[#allocation8 + $0x20] sm:$0xff] %v344_v42  ;;  %368 = vst [vmem:[#allocation8 + $0x60] sm:$0xff] %v352_v43 }
 0x150   :  { %v235_v46 = vpop.f32.mrb[10].mxu0  ;;  %v275_v47 = vpop.f32.mrb[10].mxu1 }
 0x151   :  { %v345_v48 = vmul.f32 0.00048828125, %v235_v46  ;;  %v353_v49 = vmul.f32 0.00048828125, %v275_v47  ;;  %v237_v50 = vpop.f32.mrb[11].mxu0  ;;  %v277_v51 = vpop.f32.mrb[11].mxu1 }
 0x153   :  { %361 = vst [vmem:[#allocation8 + $0x28] sm:$0xff] %v345_v48  ;;  %369 = vst [vmem:[#allocation8 + $0x68] sm:$0xff] %v353_v49 }
 0x154   :  { %v240_v52 = vpop.f32.mrb[12].mxu0  ;;  %v280_v53 = vpop.f32.mrb[12].mxu1 }
 0x155   :  { %v346_v54 = vmul.f32 0.00048828125, %v240_v52  ;;  %v354_v55 = vmul.f32 0.00048828125, %v280_v53  ;;  %v242_v56 = vpop.f32.mrb[13].mxu0  ;;  %v282_v57 = vpop.f32.mrb[13].mxu1 }
 0x157   :  { %362 = vst [vmem:[#allocation8 + $0x30] sm:$0xff] %v346_v54  ;;  %370 = vst [vmem:[#allocation8 + $0x70] sm:$0xff] %v354_v55 }
 0x158   :  { %v245_v58 = vpop.f32.mrb[14].mxu0  ;;  %v285_v59 = vpop.f32.mrb[14].mxu1 }
 0x159   :  { %v347_v60 = vmul.f32 0.00048828125, %v245_v58  ;;  %v355_v61 = vmul.f32 0.00048828125, %v285_v59  ;;  %v247_v62 = vpop.f32.mrb[15].mxu0  ;;  %v287_v63 = vpop.f32.mrb[15].mxu1 }
 0x15b   :  { %363 = vst [vmem:[#allocation8 + $0x38] sm:$0xff] %v347_v60  ;;  %371 = vst [vmem:[#allocation8 + $0x78] sm:$0xff] %v355_v61 }
 0x15c   :  { %500 = shalt.err (!%p497_p6)
}
 0x15d   :  { %s501_s10 = scalar_lea.hbm %s577_s2, 2048 }
 0x15e   :  { %p502_p7 = scmp.ne.s32.totalorder %s577_s2, %s501_s10  ;;  %p505_p8 = scmp.lt.u32.totalorder %s501_s10, %s577_s2 }
 0x160   :  { %p507_p9 = pnand %p505_p8, %p502_p7 }
 0x162   :  { %510 = shalt.err (!%p507_p9)
}
 0x163   :  { %s522_s15 = smov 128   ;;  %s523_s16 = smov 8  }
 0x164   :  { %383 = dma.vmem_to_hbm [thread:$0]  %s378_s6, 2048, %s577_s2, [#allocation5], %s522_s15, %s522_s15, %s523_s16  }
 0x165   :  { %515 = dma.done.wait [#allocation5], 2048  }
 0x166   :  { %516 = vsyncadd [#allocation5], 4294965248 }
 0x167   :  { %387 = vsyncpa [#allocation4], 1 }
 0x168   :  { %388 = vsyncpa [#allocation7], 1 }
 0x169   :  { %389 = vsyncpa [#allocation5], 1 }

</bundles_post_ra>
